<compile_context>
chip_gen: v7x
topology: tpu7x:2x2x1
jax: 0.10.0
libtpu: 0.0.40
codegen_flags: <defaults>
</compile_context>

<pallas_src>
import math
import functools
import numpy as np
import jax
import jax.numpy as jnp
from jax.experimental import pallas as pl
from jax.experimental.pallas import tpu as pltpu


# bf16 one-hot / edge operands run the MXU at native rate and halve the edge HBM
# traffic; 0/1 one-hot values are exact in bf16 but edge_attr rounds at ~4e-3
# relative, so the reference check below uses a relaxed (5e-2) tolerance.
SCATTER_DTYPE = jnp.bfloat16


def _round_up(a, m):
    return (a + m - 1) // m * m


def node_model_kernel(edge_chunk,
                      xu_ref, edgesT_ref, src_ref,
                      w1xu_ref, w1agg_ref, b1_ref, w2_ref, b2_ref,
                      out_ref, acc_ref):
    """grid = (node tiles, edge tiles); edge axis is the reduction ('arbitrary') axis.

    acc_ref (De+1, tile_n) accumulates [edge-feature sums ; edge counts] (transposed:
    nodes on the lane axis) for the current node tile across edge tiles.  The mean,
    and the fused 2-layer MLP run once per node tile, at the last edge step.
    """
    i = pl.program_id(0)
    e = pl.program_id(1)
    tile_n = xu_ref.shape[0]
    tile_e = src_ref.shape[0]
    De = edgesT_ref.shape[0] - 1          # last ROW of edgesT is all ones (fused counts)

    @pl.when(e == 0)
    def _init():
        acc_ref[...] = jnp.zeros_like(acc_ref)

    # ---- scatter-sum (+ fused counts), reoriented + chunked over the edge axis ----
    # onehot[j, n] = (src[j] == i*tile_n + n): edges on sublanes, nodes on lanes.
    node_ids = i * tile_n + jax.lax.broadcasted_iota(jnp.int32, (edge_chunk, tile_n), 1)
    n_chunks = tile_e // edge_chunk
    for c in range(n_chunks):                       # static, small trip count
        lo = c * edge_chunk
        hi = lo + edge_chunk
        src = src_ref[lo:hi, :]                                        # (chunk, 1) int32
        onehot = (src == node_ids).astype(SCATTER_DTYPE)               # (chunk, tile_n)
        edges = edgesT_ref[:, lo:hi]                                   # (De+1, chunk) bf16
        acc_ref[...] += jnp.dot(edges, onehot,
                                preferred_element_type=jnp.float32)    # (De+1, tile_n)

    # ---- finalize this node tile: mean, fused 2-layer MLP, lane-dense store --------
    @pl.when(e == pl.num_programs(1) - 1)
    def _finalize():
        acc = acc_ref[...]                                             # (De+1, tile_n)
        counts = acc[De:De + 1, :]                                     # (1, tile_n)
        inv = pl.reciprocal(jnp.maximum(counts, 1.0), approx=False)    # empty groups -> 0
        aggT = acc[:De, :] * inv                                       # (De, tile_n)

        # W1 split into [x|u] rows (xu pre-concatenated in the wrapper) and agg rows,
        # so no in-kernel lane concat is needed; the tiny (De, tile_n) agg transpose
        # happens once per node tile.
        h = (jnp.dot(xu_ref[...], w1xu_ref[...], preferred_element_type=jnp.float32)
             + jnp.dot(aggT.T, w1agg_ref[...], preferred_element_type=jnp.float32)
             + b1_ref[...])
        h = jnp.maximum(h, 0.0)
        out_ref[...] = (jnp.dot(h, w2_ref[...], preferred_element_type=jnp.float32)
                        + b2_ref[...]).astype(out_ref.dtype)


def node_model_with_global(x, edge_index, edge_attr, u, batch, params,
                           *, tile_n=512, tile_e=2048, edge_chunk=256):
    """JAX wrapper. params = (w1, b1, w2, b2) with w1: (Dx+De+Dg, H), w2: (H, Dout)."""
    w1, b1, w2, b2 = params
    N, Dx = x.shape
    E, De = edge_attr.shape
    B, Dg = u.shape
    H = w1.shape[1]
    Dout = w2.shape[1]
    Dxu = Dx + Dg
    f32 = jnp.float32

    # Tile sizing: indices / edge features live on the 128-lane axis, so tiles are
    # multiples of 128 (or the whole padded extent).  edge_chunk divides tile_e.
    tile_n = min(tile_n, _round_up(N, 128))
    tile_e = min(tile_e, _round_up(E, 128))
    edge_chunk = math.gcd(min(edge_chunk, tile_e), tile_e)
    n_pad = _round_up(N, tile_n)
    e_pad = _round_up(E, tile_e)
    h_pad = _round_up(H, 128)              # lane-dense hidden dim
    dout_pad = _round_up(Dout, 128)        # lane-dense output stores

    # ---- wrapper-side preprocessing (cheap XLA ops, done once) ---------------------
    # u[batch] gather hoisted out of the kernel and pre-concatenated with x.
    xu = jnp.concatenate([x.astype(f32), u.astype(f32)[batch]], axis=1)      # (N, Dx+Dg)
    xu_p = jnp.zeros((n_pad, Dxu), f32).at[:N].set(xu)

    # Transposed, count-augmented, bf16 edge features: (De+1, e_pad); row De = ones.
    edgesT = jnp.concatenate([edge_attr.astype(f32).T, jnp.ones((1, E), f32)], axis=0)
    edgesT_p = (jnp.zeros((De + 1, e_pad), f32).at[:, :E].set(edgesT)
                ).astype(SCATTER_DTYPE)

    # Source node id per edge as a column; -1 padding never matches a node id.
    src_p = jnp.full((e_pad, 1), -1, jnp.int32).at[:E, 0].set(edge_index[0].astype(jnp.int32))

    # Split + lane-pad the MLP weights (combined order in the reference is [x, agg, u]).
    w1 = w1.astype(f32)
    w1_xu = jnp.concatenate([w1[:Dx], w1[Dx + De:]], axis=0)      # rows for [x, u]
    w1_agg = w1[Dx:Dx + De]                                       # rows for agg
    w1xu_p = jnp.zeros((Dxu, h_pad), f32).at[:, :H].set(w1_xu)
    w1agg_p = jnp.zeros((De, h_pad), f32).at[:, :H].set(w1_agg)
    b1_p = jnp.zeros((1, h_pad), f32).at[0, :H].set(b1.astype(f32))
    w2_p = jnp.zeros((h_pad, dout_pad), f32).at[:H, :Dout].set(w2.astype(f32))
    b2_p = jnp.zeros((1, dout_pad), f32).at[0, :Dout].set(b2.astype(f32))

    grid = (n_pad // tile_n, e_pad // tile_e)

    flops = (2 * n_pad * e_pad * (De + 1)          # scatter-sum + counts
             + 2 * n_pad * Dxu * h_pad             # MLP layer-1 [x|u] slice
             + 2 * n_pad * De * h_pad              # MLP layer-1 agg slice
             + 2 * n_pad * h_pad * dout_pad)       # MLP layer 2
    bytes_accessed = int(xu_p.size * 4 + edgesT_p.size * 2 + src_p.size * 4
                         + (w1xu_p.size + w1agg_p.size + b1_p.size
                            + w2_p.size + b2_p.size) * 4
                         + n_pad * dout_pad * 4)

    kernel = functools.partial(node_model_kernel, edge_chunk)

    out = pl.pallas_call(
        kernel,
        out_shape=jax.ShapeDtypeStruct((n_pad, dout_pad), f32),
        grid_spec=pltpu.PrefetchScalarGridSpec(
            num_scalar_prefetch=0,
            grid=grid,
            in_specs=[
                pl.BlockSpec((tile_n, Dxu), lambda i, e: (i, 0)),        # [x | u[batch]]
                pl.BlockSpec((De + 1, tile_e), lambda i, e: (0, e)),     # edgesT (+ counts row)
                pl.BlockSpec((tile_e, 1), lambda i, e: (e, 0)),          # src node ids (column)
                pl.BlockSpec((Dxu, h_pad), lambda i, e: (0, 0)),         # w1 rows for [x|u]
                pl.BlockSpec((De, h_pad), lambda i, e: (0, 0)),          # w1 rows for agg
                pl.BlockSpec((1, h_pad), lambda i, e: (0, 0)),           # b1 (lane-padded)
                pl.BlockSpec((h_pad, dout_pad), lambda i, e: (0, 0)),    # w2 (lane-padded)
                pl.BlockSpec((1, dout_pad), lambda i, e: (0, 0)),        # b2 (lane-padded)
            ],
            out_specs=pl.BlockSpec((tile_n, dout_pad), lambda i, e: (i, 0)),
            scratch_shapes=[pltpu.VMEM((De + 1, tile_n), jnp.float32)],  # [sums ; counts]^T acc
        ),
        compiler_params=pltpu.CompilerParams(
            dimension_semantics=("parallel", "arbitrary"),
            vmem_limit_bytes=32 * 1024 * 1024),   # footprint <8 MiB; safe for v7x's 64 MiB VMEM
        cost_estimate=pl.CostEstimate(
            flops=flops, transcendentals=0, bytes_accessed=bytes_accessed),
    )(xu_p, edgesT_p, src_p, w1xu_p, w1agg_p, b1_p, w2_p, b2_p)

    return out[:N, :Dout]


def ref_forward(x, edge_index, edge_attr, u, batch, params):
    """Pure-JAX reference matching the PyTorch forward semantics."""
    w1, b1, w2, b2 = params
    N = x.shape[0]
    src = edge_index[0]
    sums = jax.ops.segment_sum(edge_attr, src, num_segments=N)
    counts = jax.ops.segment_sum(jnp.ones((edge_attr.shape[0],), jnp.float32),
                                 src, num_segments=N)
    agg = sums / jnp.maximum(counts, 1.0)[:, None]
    combined = jnp.concatenate([x, agg, u[batch]], axis=1)
    h = jnp.maximum(combined @ w1 + b1, 0.0)
    return h @ w2 + b2


if __name__ == "__main__":
    # Small, deterministic problem sizes consistent with the module.
    N = 64            # nodes
    E = 128           # edges
    B = 4             # graphs in the batch
    node_in_dim = 16
    edge_out_dim = 16
    global_in_dim = 16
    node_out_dim = 16
    hidden_dim = 64
    d_in = node_in_dim + edge_out_dim + global_in_dim

    key = jax.random.PRNGKey(0)
    k = jax.random.split(key, 8)

    # Deterministic synthetic parameters (not a checkpoint load).
    w1 = jax.random.normal(k[0], (d_in, hidden_dim), jnp.float32) * 0.1
    b1 = jax.random.normal(k[1], (hidden_dim,), jnp.float32) * 0.01
    w2 = jax.random.normal(k[2], (hidden_dim, node_out_dim), jnp.float32) * 0.1
    b2 = jax.random.normal(k[3], (node_out_dim,), jnp.float32) * 0.01
    params = (w1, b1, w2, b2)

    # Inputs.
    x = jax.random.normal(k[4], (N, node_in_dim), jnp.float32)
    edge_attr = jax.random.normal(k[5], (E, edge_out_dim), jnp.float32)
    u = jax.random.normal(k[6], (B, global_in_dim), jnp.float32)
    edge_index = jax.random.randint(k[7], (2, E), 0, N, jnp.int32)
    batch = jnp.repeat(jnp.arange(B, dtype=jnp.int32), N // B)   # (N,) graph assignment

    out = node_model_with_global(x, edge_index, edge_attr, u, batch, params)
    out = jax.block_until_ready(out)

    ref = ref_forward(x, edge_index, edge_attr, u, batch, params)
    assert out.shape == (N, node_out_dim)
    # bf16 edge-feature path -> relaxed tolerance (edge_attr rounds at ~4e-3 relative).
    assert np.allclose(np.asarray(out), np.asarray(ref), atol=5e-2, rtol=5e-2)

    print("KERNEL_OK")
</pallas_src>

<mosaic_0001>
module attributes {stable_mosaic.version = 11 : i64} {
  func.func @node_model_kernel(%arg0: i32, %arg1: i32, %arg2: memref<128x32xf32, #tpu.memory_space<vmem>>, %arg3: memref<17x128xbf16, #tpu.memory_space<vmem>>, %arg4: memref<128x1xi32, #tpu.memory_space<vmem>>, %arg5: memref<32x128xf32, #tpu.memory_space<vmem>>, %arg6: memref<16x128xf32, #tpu.memory_space<vmem>>, %arg7: memref<1x128xf32, #tpu.memory_space<vmem>>, %arg8: memref<128x128xf32, #tpu.memory_space<vmem>>, %arg9: memref<1x128xf32, #tpu.memory_space<vmem>>, %arg10: memref<128x128xf32, #tpu.memory_space<vmem>>, %arg11: memref<17x128xf32, #tpu.memory_space<vmem>>) attributes {dimension_semantics = [#tpu.dimension_semantics<parallel>, #tpu.dimension_semantics<arbitrary>], iteration_bounds = array<i64: 1, 1>, scalar_prefetch = 0 : i64, scratch_operands = 1 : i64, tpu.core_type = #tpu.core_type<tc>, window_params = [{transform_indices = @transform_0, window_bounds = array<i64: 128, 32>}, {transform_indices = @transform_1, window_bounds = array<i64: 17, 128>}, {transform_indices = @transform_2, window_bounds = array<i64: 128, 1>}, {pipeline_mode = #tpu.pipeline_mode<synchronous>, transform_indices = @transform_3, window_bounds = array<i64: 32, 128>}, {pipeline_mode = #tpu.pipeline_mode<synchronous>, transform_indices = @transform_4, window_bounds = array<i64: 16, 128>}, {pipeline_mode = #tpu.pipeline_mode<synchronous>, transform_indices = @transform_5, window_bounds = array<i64: 1, 128>}, {pipeline_mode = #tpu.pipeline_mode<synchronous>, transform_indices = @transform_6, window_bounds = array<i64: 128, 128>}, {pipeline_mode = #tpu.pipeline_mode<synchronous>, transform_indices = @transform_7, window_bounds = array<i64: 1, 128>}, {transform_indices = @transform_8, window_bounds = array<i64: 128, 128>}]} {
    %c0_i32 = arith.constant 0 : i32
    %0 = arith.cmpi eq, %arg1, %c0_i32 : i32
    %1 = arith.extui %0 : i1 to i32
    %c0_i32_0 = arith.constant 0 : i32
    %2 = arith.cmpi ne, %1, %c0_i32_0 : i32
    scf.if %2 {
      %cst_10 = arith.constant 0.000000e+00 : f32
      %21 = vector.broadcast %cst_10 : f32 to vector<17x128xf32>
      %c0_11 = arith.constant 0 : index
      %c0_12 = arith.constant 0 : index
      %22 = vector.load %arg11[%c0_11, %c0_12] : memref<17x128xf32, #tpu.memory_space<vmem>>, vector<17x128xf32>
      tpu.vector_store %arg11[%c0_11, %c0_12], %21 {strides = array<i32>} : memref<17x128xf32, #tpu.memory_space<vmem>>, vector<17x128xf32>,
    } else {
    }
    %c128_i32 = arith.constant 128 : i32
    %3 = arith.muli %arg0, %c128_i32 : i32
    %4 = tpu.iota {dimensions = array<i32: 1>} : vector<128x128xi32>
    %5 = vector.broadcast %3 : i32 to vector<128x128xi32>
    %6 = arith.addi %5, %4 : vector<128x128xi32>
    %c0 = arith.constant 0 : index
    %c0_1 = arith.constant 0 : index
    %7 = vector.load %arg4[%c0, %c0_1] : memref<128x1xi32, #tpu.memory_space<vmem>>, vector<128x1xi32>
    %8 = vector.broadcast %7 : vector<128x1xi32> to vector<128x128xi32>
    %9 = arith.cmpi eq, %8, %6 : vector<128x128xi32>
    %10 = arith.extui %9 : vector<128x128xi1> to vector<128x128xi32>
    %11 = arith.sitofp %10 : vector<128x128xi32> to vector<128x128xf32>
    %12 = arith.truncf %11 : vector<128x128xf32> to vector<128x128xbf16>
    %c0_2 = arith.constant 0 : index
    %c0_3 = arith.constant 0 : index
    %13 = vector.load %arg3[%c0_2, %c0_3] : memref<17x128xbf16, #tpu.memory_space<vmem>>, vector<17x128xbf16>
    %c0_4 = arith.constant 0 : index
    %c0_5 = arith.constant 0 : index
    %14 = vector.load %arg11[%c0_4, %c0_5] : memref<17x128xf32, #tpu.memory_space<vmem>>, vector<17x128xf32>
    %cst = arith.constant dense<0.000000e+00> : vector<17x128xf32>
    %15 = tpu.matmul %13, %12, %cst {dimension_numbers = #tpu.dot_dimension_numbers<[1], [0], [0], [1], [0, 0, 1, 1], [], []>} : vector<17x128xbf16>, vector<128x128xbf16>, vector<17x128xf32> -> vector<17x128xf32>
    %16 = arith.addf %14, %15 : vector<17x128xf32>
    %c0_6 = arith.constant 0 : index
    %c0_7 = arith.constant 0 : index
    %17 = vector.load %arg11[%c0_6, %c0_7] : memref<17x128xf32, #tpu.memory_space<vmem>>, vector<17x128xf32>
    tpu.vector_store %arg11[%c0_6, %c0_7], %16 {strides = array<i32>} : memref<17x128xf32, #tpu.memory_space<vmem>>, vector<17x128xf32>,
    %c0_i32_8 = arith.constant 0 : i32
    %18 = arith.cmpi eq, %arg1, %c0_i32_8 : i32
    %19 = arith.extui %18 : i1 to i32
    %c0_i32_9 = arith.constant 0 : i32
    %20 = arith.cmpi ne, %19, %c0_i32_9 : i32
    scf.if %20 {
      %c0_10 = arith.constant 0 : index
      %c0_11 = arith.constant 0 : index
      %21 = vector.load %arg11[%c0_10, %c0_11] : memref<17x128xf32, #tpu.memory_space<vmem>>, vector<17x128xf32>
      %22 = vector.extract_strided_slice %21 {offsets = [16, 0], sizes = [1, 128], strides = [1, 1]} : vector<17x128xf32> to vector<1x128xf32>
      %cst_12 = arith.constant 1.000000e+00 : f32
      %23 = vector.broadcast %cst_12 : f32 to vector<1x128xf32>
      %24 = arith.maximumf %22, %23 : vector<1x128xf32>
      %25 = tpu.reciprocal %24 : vector<1x128xf32> -> vector<1x128xf32>
      %26 = vector.extract_strided_slice %21 {offsets = [0, 0], sizes = [16, 128], strides = [1, 1]} : vector<17x128xf32> to vector<16x128xf32>
      %27 = vector.broadcast %25 : vector<1x128xf32> to vector<16x128xf32>
      %28 = arith.mulf %26, %27 : vector<16x128xf32>
      %c0_13 = arith.constant 0 : index
      %c0_14 = arith.constant 0 : index
      %29 = vector.load %arg2[%c0_13, %c0_14] : memref<128x32xf32, #tpu.memory_space<vmem>>, vector<128x32xf32>
      %c0_15 = arith.constant 0 : index
      %c0_16 = arith.constant 0 : index
      %30 = vector.load %arg5[%c0_15, %c0_16] : memref<32x128xf32, #tpu.memory_space<vmem>>, vector<32x128xf32>
      %cst_17 = arith.constant dense<0.000000e+00> : vector<128x128xf32>
      %31 = tpu.matmul %29, %30, %cst_17 {dimension_numbers = #tpu.dot_dimension_numbers<[1], [0], [0], [1], [0, 0, 1, 1], [], []>} : vector<128x32xf32>, vector<32x128xf32>, vector<128x128xf32> -> vector<128x128xf32>
      %32 = tpu.transpose %28, [1, 0] : vector<16x128xf32> -> vector<128x16xf32>
      %c0_18 = arith.constant 0 : index
      %c0_19 = arith.constant 0 : index
      %33 = vector.load %arg6[%c0_18, %c0_19] : memref<16x128xf32, #tpu.memory_space<vmem>>, vector<16x128xf32>
      %cst_20 = arith.constant dense<0.000000e+00> : vector<128x128xf32>
      %34 = tpu.matmul %32, %33, %cst_20 {dimension_numbers = #tpu.dot_dimension_numbers<[1], [0], [0], [1], [0, 0, 1, 1], [], []>} : vector<128x16xf32>, vector<16x128xf32>, vector<128x128xf32> -> vector<128x128xf32>
      %35 = arith.addf %31, %34 : vector<128x128xf32>
      %c0_21 = arith.constant 0 : index
      %c0_22 = arith.constant 0 : index
      %36 = vector.load %arg7[%c0_21, %c0_22] : memref<1x128xf32, #tpu.memory_space<vmem>>, vector<1x128xf32>
      %37 = vector.broadcast %36 : vector<1x128xf32> to vector<128x128xf32>
      %38 = arith.addf %35, %37 : vector<128x128xf32>
      %cst_23 = arith.constant 0.000000e+00 : f32
      %39 = vector.broadcast %cst_23 : f32 to vector<128x128xf32>
      %40 = arith.maximumf %38, %39 : vector<128x128xf32>
      %c0_24 = arith.constant 0 : index
      %c0_25 = arith.constant 0 : index
      %41 = vector.load %arg8[%c0_24, %c0_25] : memref<128x128xf32, #tpu.memory_space<vmem>>, vector<128x128xf32>
      %cst_26 = arith.constant dense<0.000000e+00> : vector<128x128xf32>
      %42 = tpu.matmul %40, %41, %cst_26 {dimension_numbers = #tpu.dot_dimension_numbers<[1], [0], [0], [1], [0, 0, 1, 1], [], []>} : vector<128x128xf32>, vector<128x128xf32>, vector<128x128xf32> -> vector<128x128xf32>
      %c0_27 = arith.constant 0 : index
      %c0_28 = arith.constant 0 : index
      %43 = vector.load %arg9[%c0_27, %c0_28] : memref<1x128xf32, #tpu.memory_space<vmem>>, vector<1x128xf32>
      %44 = vector.broadcast %43 : vector<1x128xf32> to vector<128x128xf32>
      %45 = arith.addf %42, %44 : vector<128x128xf32>
      %c0_29 = arith.constant 0 : index
      %c0_30 = arith.constant 0 : index
      %46 = vector.load %arg10[%c0_29, %c0_30] : memref<128x128xf32, #tpu.memory_space<vmem>>, vector<128x128xf32>
      tpu.vector_store %arg10[%c0_29, %c0_30], %45 {strides = array<i32>} : memref<128x128xf32, #tpu.memory_space<vmem>>, vector<128x128xf32>,
    } else {
    }
    return
  }
  func.func @transform_0(%arg0: i32, %arg1: i32) -> (i32, i32) {
    %c0_i32 = arith.constant 0 : i32
    %c0_i32_0 = arith.constant 0 : i32
    return %arg0, %c0_i32 : i32, i32
  }
  func.func @transform_1(%arg0: i32, %arg1: i32) -> (i32, i32) {
    %c0_i32 = arith.constant 0 : i32
    %c0_i32_0 = arith.constant 0 : i32
    return %c0_i32, %arg1 : i32, i32
  }
  func.func @transform_2(%arg0: i32, %arg1: i32) -> (i32, i32) {
    %c0_i32 = arith.constant 0 : i32
    %c0_i32_0 = arith.constant 0 : i32
    return %arg1, %c0_i32 : i32, i32
  }
  func.func @transform_3(%arg0: i32, %arg1: i32) -> (i32, i32) {
    %c0_i32 = arith.constant 0 : i32
    %c0_i32_0 = arith.constant 0 : i32
    %c0_i32_1 = arith.constant 0 : i32
    return %c0_i32, %c0_i32_0 : i32, i32
  }
  func.func @transform_4(%arg0: i32, %arg1: i32) -> (i32, i32) {
    %c0_i32 = arith.constant 0 : i32
    %c0_i32_0 = arith.constant 0 : i32
    %c0_i32_1 = arith.constant 0 : i32
    return %c0_i32, %c0_i32_0 : i32, i32
  }
  func.func @transform_5(%arg0: i32, %arg1: i32) -> (i32, i32) {
    %c0_i32 = arith.constant 0 : i32
    %c0_i32_0 = arith.constant 0 : i32
    %c0_i32_1 = arith.constant 0 : i32
    return %c0_i32, %c0_i32_0 : i32, i32
  }
  func.func @transform_6(%arg0: i32, %arg1: i32) -> (i32, i32) {
    %c0_i32 = arith.constant 0 : i32
    %c0_i32_0 = arith.constant 0 : i32
    %c0_i32_1 = arith.constant 0 : i32
    return %c0_i32, %c0_i32_0 : i32, i32
  }
  func.func @transform_7(%arg0: i32, %arg1: i32) -> (i32, i32) {
    %c0_i32 = arith.constant 0 : i32
    %c0_i32_0 = arith.constant 0 : i32
    %c0_i32_1 = arith.constant 0 : i32
    return %c0_i32, %c0_i32_0 : i32, i32
  }
  func.func @transform_8(%arg0: i32, %arg1: i32) -> (i32, i32) {
    %c0_i32 = arith.constant 0 : i32
    %c0_i32_0 = arith.constant 0 : i32
    return %arg0, %c0_i32 : i32, i32
  }
}

</mosaic_0001>

<bundles_post_ra>
// kernel: tpu_custom_call.1
= control target key start
LH: loop header
LB: loop body
LE: loop exit
PB: predicated region body
PF: predicated region fallthrough
CT: control target
= control target key end

     0   :  { %v1324_v2 = vmov 0   ;;  %s1637_s0 = inlined_call_operand.vmem [shape: f32[128,32], index: 0, kind: input, shape index: {}]   ;;  %s1638_s1 = inlined_call_operand.vmem [shape: bf16[17,128], index: 1, kind: input, shape index: {}]   ;;  %s1639_s2 = inlined_call_operand.vmem [shape: s32[128,1], index: 2, kind: input, shape index: {}]   ;;  %s1640_s3 = inlined_call_operand.vmem [shape: f32[32,128], index: 3, kind: input, shape index: {}]   ;;  %s1641_s4 = inlined_call_operand.vmem [shape: f32[16,128], index: 4, kind: input, shape index: {}]   ;;  %s1642_s5 = inlined_call_operand.vmem [shape: f32[1,128], index: 5, kind: input, shape index: {}]   ;;  %s1643_s6 = inlined_call_operand.vmem [shape: f32[128,128], index: 6, kind: input, shape index: {}]   ;;  %s1644_s7 = inlined_call_operand.vmem [shape: f32[1,128], index: 7, kind: input, shape index: {}]   ;;  %s1645_s8 = inlined_call_operand.hbm [shape: f32[128,128], index: 8, kind: output, shape index: {}]  }
   0x1   :  { %v45_v0 = vld [vmem:[%s1639_s2 + $0x10] sm:$0xff]  ;;  %v43_v1 = vld [vmem:[%s1639_s2] sm:$0xff]  ;;  %1295 = vset.pattern.permute.xlu1 %v1324_v2  ;;  %1294 = vset.pattern.permute.xlu0 %v1324_v2  ;;  %v46_v3 = vld [vmem:[%s1639_s2 + $0x18] sm:$0xff] }
   0x2   :  { %66 = vperm.xlu1 %1295, %v45_v0   ;;  %60 = vperm.xlu0 %1294, %v43_v1   ;;  %v44_v4 = vld [vmem:[%s1639_s2 + $0x8] sm:$0xff] }
   0x6   :  { %69 = vperm.xlu1 %1295, %v46_v3   ;;  %63 = vperm.xlu0 %1294, %v44_v4  }
   0x7   :  { %13 = vsyncpa [#allocation4], 0  ;;  %v48_v5 = vld [vmem:[%s1639_s2 + $0x28] sm:$0xff]  ;;  %v47_v6 = vld [vmem:[%s1639_s2 + $0x20] sm:$0xff]  ;;  %v1325_v18 = vmov 0.0   ;;  %v39_v19 = vlaneseq }
   0x8   :  { %v50_v7 = vld [vmem:[%s1639_s2 + $0x38] sm:$0xff]  ;;  %v49_v8 = vld [vmem:[%s1639_s2 + $0x30] sm:$0xff]  ;;  %v52_v9 = vld [vmem:[%s1639_s2 + $0x48] sm:$0xff]  ;;  %37 = vst [vmem:[#allocation2 + $0x10] sm:$0x1] %v1325_v18 }
   0x9   :  { %v51_v10 = vld [vmem:[%s1639_s2 + $0x40] sm:$0xff]  ;;  %v54_v11 = vld [vmem:[%s1639_s2 + $0x58] sm:$0xff]  ;;  %v53_v12 = vld [vmem:[%s1639_s2 + $0x50] sm:$0xff]  ;;  %v40_v22 = vand.u32 127, %v39_v19  ;;  %v1326_v25 = vmov 1.0|1.0  }
   0xa   :  { %75 = vperm.xlu1 %1295, %v48_v5   ;;  %72 = vperm.xlu0 %1294, %v47_v6   ;;  %v56_v13 = vld [vmem:[%s1639_s2 + $0x68] sm:$0xff]  ;;  %v55_v14 = vld [vmem:[%s1639_s2 + $0x60] sm:$0xff]  ;;  %v58_v15 = vld [vmem:[%s1639_s2 + $0x78] sm:$0xff]  ;;  %v242_v47 = vshrl.u32 %v39_v19, 7 }
   0xb   :  { %v57_v16 = vld [vmem:[%s1639_s2 + $0x70] sm:$0xff]  ;;  %v1296_v17 = vld [vmem:[%s1638_s1] sm:$0xff]   ;;  %v1297_v38 = vld [vmem:[%s1638_s1 + $0x8] ss:$0 sps:$4 sm:$0x11]  }
   0xc   :  { %1092 = vmatprep.mubr.bf16.mxu0 %v1296_v17  ;;  %v243_v48 = vsub.s32 0, %v242_v47  ;;  %v299_v52 = vld [vmem:[%s1641_s4] sm:$0xff]  ;;  %v300_v53 = vld [vmem:[%s1641_s4 + $0x8] sm:$0xff]  ;;  %v730_v61 = vld [vmem:[%s1643_s6 + $0x10] sm:$0xff] }
   0xd   :  { %v1212_v54 = vpack.c.bf16 %v300_v53, %v299_v52  ;;  %v263_v56 = vld [vmem:[%s1640_s3] sm:$0xff]  ;;  %v264_v57 = vld [vmem:[%s1640_s3 + $0x8] sm:$0xff]  ;;  %v731_v63 = vld [vmem:[%s1643_s6 + $0x18] sm:$0xff] }
   0xe   :  { %81 = vperm.xlu1 %1295, %v50_v7   ;;  %78 = vperm.xlu0 %1294, %v49_v8   ;;  %v1216_v58 = vpack.c.bf16 %v264_v57, %v263_v56  ;;  %v728_v59 = vld [vmem:[%s1643_s6] sm:$0xff]  ;;  %v729_v60 = vld [vmem:[%s1643_s6 + $0x8] sm:$0xff]  ;;  %v1457_v0 = vpack.c.bf16 %v731_v63, %v730_v61  ;;  %v734_v4 = vld [vmem:[%s1643_s6 + $0x30] sm:$0xff] }
   0xf   :  { %v168_v39 = vld [vmem:[#allocation2 + $0x10] sm:$0x1]  ;;  %1213 = vmatprep.subr.bf16.mxu1 %v1212_v54  ;;  %v1452_v62 = vpack.c.bf16 %v729_v60, %v728_v59  ;;  %v732_v1 = vld [vmem:[%s1643_s6 + $0x20] sm:$0xff]  ;;  %v733_v2 = vld [vmem:[%s1643_s6 + $0x28] sm:$0xff] }
  0x10   :  { %1215 = vmatpush3.bf16.msra.mxu1 %v1212_v54  ;;  %v1468_v3 = vpack.c.bf16 %v733_v2, %v732_v1  ;;  %v735_v5 = vld [vmem:[%s1643_s6 + $0x38] sm:$0xff]  ;;  %v736_v7 = vld [vmem:[%s1643_s6 + $0x40] sm:$0xff]  ;;  %v737_v8 = vld [vmem:[%s1643_s6 + $0x48] sm:$0xff] }
  0x11   :  { %1217 = vmatprep.subr.bf16.mxu1 %v1216_v58  ;;  %v1478_v6 = vpack.c.bf16 %v735_v5, %v734_v4  ;;  %v265_v17 = vld [vmem:[%s1640_s3 + $0x10] sm:$0xff]  ;;  %v266_v18 = vld [vmem:[%s1640_s3 + $0x18] sm:$0xff]  ;;  %v259_v47 = vld [vmem:[%s1637_s0 + $0x60] sm:$0xff] }
  0x12   :  { %87 = vperm.xlu1 %1295, %v52_v9   ;;  %84 = vperm.xlu0 %1294, %v51_v10   ;;  %v1488_v9 = vpack.c.bf16 %v737_v8, %v736_v7  ;;  %v738_v10 = vld [vmem:[%s1643_s6 + $0x50] sm:$0xff]  ;;  %v1220_v19 = vpack.c.bf16 %v266_v18, %v265_v17  ;;  %v743_v52 = vld [vmem:[%s1643_s6 + $0x78] sm:$0xff]  ;;  %v994_v54 = vld [vmem:[%s1642_s5] ss:$0 sm:$0xff] }
  0x16   :  { %93 = vperm.xlu1 %1295, %v54_v11   ;;  %90 = vperm.xlu0 %1294, %v53_v12   ;;  %v739_v11 = vld [vmem:[%s1643_s6 + $0x58] sm:$0xff] }
  0x17   :  { %v1498_v12 = vpack.c.bf16 %v739_v11, %v738_v10 }
  0x1a   :  { %99 = vperm.xlu1 %1295, %v56_v13   ;;  %96 = vperm.xlu0 %1294, %v55_v14   ;;  %v740_v13 = vld [vmem:[%s1643_s6 + $0x60] sm:$0xff]  ;;  %v741_v14 = vld [vmem:[%s1643_s6 + $0x68] sm:$0xff] }
  0x1e   :  { %105 = vperm.xlu1 %1295, %v58_v15   ;;  %102 = vperm.xlu0 %1294, %v57_v16   ;;  %v1508_v15 = vpack.c.bf16 %v741_v14, %v740_v13 }
  0x81   :  { %v67_v20 = vpop.permute.xlu1 %66  ;;  %v61_v21 = vpop.permute.xlu0 %60 }
  0x82   :  { %vm109_vm1 = vcmp.eq.s32.totalorder %v67_v20, %v40_v22  ;;  %vm107_vm2 = vcmp.eq.s32.totalorder %v61_v21, %v40_v22 }
  0x85   :  { %v70_v23 = vpop.permute.xlu1 %69  ;;  %v64_v24 = vpop.permute.xlu0 %63 }
  0x86   :  { %vm108_vm0 = vcmp.eq.s32.totalorder %v64_v24, %v40_v22  ;;  %vm110_vm3 = vcmp.eq.s32.totalorder %v70_v23, %v40_v22 }
  0x87   :  { %vm946_vm4 = vmpackc.low %vm108_vm0, %vm107_vm2 }
  0x88   :  { %1076 = vmatprep.subr.msk.bf16.mxu0 %vm946_vm4, %v1326_v25  ;;  %vm948_vm5 = vmpackc.low %vm110_vm3, %vm109_vm1 }
  0x89   :  { %v76_v26 = vpop.permute.xlu1 %75  ;;  %v73_v27 = vpop.permute.xlu0 %72  ;;  %1077 = vmatpush3.bf16.msk.msra.mxu0 %vm946_vm4, %v1326_v25 }
  0x8a   :  { %vm112_vm6 = vcmp.eq.s32.totalorder %v76_v26, %v40_v22  ;;  %vm111_vm7 = vcmp.eq.s32.totalorder %v73_v27, %v40_v22  ;;  %1078 = vmatprep.subr.msk.bf16.mxu0 %vm948_vm5, %v1326_v25 }
  0x8b   :  { %vm950_vm8 = vmpackc.low %vm112_vm6, %vm111_vm7 }
  0x8d   :  { %v82_v28 = vpop.permute.xlu1 %81  ;;  %v79_v29 = vpop.permute.xlu0 %78  ;;  %1079 = vmatpush3.bf16.msk.msra.mxu0 %vm948_vm5, %v1326_v25 }
  0x8e   :  { %vm114_vm9 = vcmp.eq.s32.totalorder %v82_v28, %v40_v22  ;;  %vm113_vm10 = vcmp.eq.s32.totalorder %v79_v29, %v40_v22  ;;  %1080 = vmatprep.subr.msk.bf16.mxu0 %vm950_vm8, %v1326_v25 }
  0x8f   :  { %vm952_vm11 = vmpackc.low %vm114_vm9, %vm113_vm10  ;;  %vm495_vm9 = vcmask 261120  }
  0x91   :  { %v88_v30 = vpop.permute.xlu1 %87  ;;  %v85_v31 = vpop.permute.xlu0 %84  ;;  %1081 = vmatpush3.bf16.msk.msra.mxu0 %vm950_vm8, %v1326_v25  ;;  %vm301_vm8 = vcmask 130048  }
  0x92   :  { %vm116_vm12 = vcmp.eq.s32.totalorder %v88_v30, %v40_v22  ;;  %vm115_vm13 = vcmp.eq.s32.totalorder %v85_v31, %v40_v22  ;;  %1082 = vmatprep.subr.msk.bf16.mxu0 %vm952_vm11, %v1326_v25 }
  0x93   :  { %vm954_vm14 = vmpackc.low %vm116_vm12, %vm115_vm13 }
  0x95   :  { %v94_v32 = vpop.permute.xlu1 %93  ;;  %v91_v33 = vpop.permute.xlu0 %90  ;;  %1083 = vmatpush3.bf16.msk.msra.mxu0 %vm952_vm11, %v1326_v25 }
  0x96   :  { %vm118_vm15 = vcmp.eq.s32.totalorder %v94_v32, %v40_v22  ;;  %vm117_vm0 = vcmp.eq.s32.totalorder %v91_v33, %v40_v22  ;;  %1084 = vmatprep.subr.msk.bf16.mxu0 %vm954_vm14, %v1326_v25 }
  0x97   :  { %vm956_vm1 = vmpackc.low %vm118_vm15, %vm117_vm0 }
  0x99   :  { %v100_v34 = vpop.permute.xlu1 %99  ;;  %v97_v35 = vpop.permute.xlu0 %96  ;;  %1085 = vmatpush3.bf16.msk.msra.mxu0 %vm954_vm14, %v1326_v25 }
  0x9a   :  { %vm120_vm2 = vcmp.eq.s32.totalorder %v100_v34, %v40_v22  ;;  %vm119_vm3 = vcmp.eq.s32.totalorder %v97_v35, %v40_v22  ;;  %1086 = vmatprep.subr.msk.bf16.mxu0 %vm956_vm1, %v1326_v25  ;;  %v247_v34 = vld [vmem:[%s1637_s0] sm:$0xff] }
  0x9b   :  { %vm958_vm4 = vmpackc.low %vm120_vm2, %vm119_vm3 }
  0x9d   :  { %v106_v36 = vpop.permute.xlu1 %105  ;;  %v103_v37 = vpop.permute.xlu0 %102  ;;  %1087 = vmatpush3.bf16.msk.msra.mxu0 %vm956_vm1, %v1326_v25 }
  0x9e   :  { %vm122_vm5 = vcmp.eq.s32.totalorder %v106_v36, %v40_v22  ;;  %vm121_vm6 = vcmp.eq.s32.totalorder %v103_v37, %v40_v22  ;;  %1088 = vmatprep.subr.msk.bf16.mxu0 %vm958_vm4, %v1326_v25  ;;  %v248_v36 = vld [vmem:[%s1637_s0 + $0x8] sm:$0xff]  ;;  %v249_v37 = vld [vmem:[%s1637_s0 + $0x10] sm:$0xff] }
  0x9f   :  { %vm960_vm7 = vmpackc.low %vm122_vm5, %vm121_vm6 }
  0xa1   :  { %1089 = vmatpush3.bf16.msk.msra.mxu0 %vm958_vm4, %v1326_v25 }
  0xa2   :  { %1090 = vmatprep.subr.msk.bf16.mxu0 %vm960_vm7, %v1326_v25 }
  0xa5   :  { %1091 = vmatpush3.bf16.msk.msra.mxu0 %vm960_vm7, %v1326_v25 }
  0xa6   :  { %1225 = vmatprep.subr.bf16.mxu0 %v1452_v62 }
  0xa8   :  { %1093 = vmatmul.mubr.bf16.vlgmr.msra.gmra.mrb[0].mxu0 %v1297_v38  ;;  %v250_v38 = vld [vmem:[%s1637_s0 + $0x18] sm:$0xff] }
  0xa9   :  { %1227 = vmatpush3.bf16.msra.mxu0 %v1452_v62 }
  0xaa   :  { %1229 = vmatprep.subr.bf16.mxu0 %v1457_v0 }
  0xad   :  { %1231 = vmatpush3.bf16.msra.mxu0 %v1457_v0 }
  0xae   :  { %1233 = vmatprep.subr.bf16.mxu0 %v1468_v3 }
  0xb1   :  { %1235 = vmatpush3.bf16.msra.mxu0 %v1468_v3 }
  0xb2   :  { %1237 = vmatprep.subr.bf16.mxu0 %v1478_v6 }
  0xb5   :  { %1239 = vmatpush3.bf16.msra.mxu0 %v1478_v6 }
  0xb6   :  { %1241 = vmatprep.subr.bf16.mxu0 %v1488_v9 }
  0xb9   :  { %1243 = vmatpush3.bf16.msra.mxu0 %v1488_v9 }
  0xba   :  { %1245 = vmatprep.subr.bf16.mxu0 %v1498_v12 }
  0xbd   :  { %1247 = vmatpush3.bf16.msra.mxu0 %v1498_v12 }
  0xbe   :  { %1249 = vmatprep.subr.bf16.mxu0 %v1508_v15 }
  0xc1   :  { %1251 = vmatpush3.bf16.msra.mxu0 %v1508_v15 }
 0x17b   :  { %v1094_v40 = vpop.f32.mrb[0].mxu0 }
 0x17c   :  { %v229_v41 = vadd.f32 %v1094_v40, %v168_v39  ;;  %v213_v42 = vpop.f32.mrb[1].mxu0  ;;  %v251_v39 = vld [vmem:[%s1637_s0 + $0x20] sm:$0xff]  ;;  %v252_v40 = vld [vmem:[%s1637_s0 + $0x28] sm:$0xff] }
 0x17d   :  { %v1095_v43 = vpop.f32.mrb[2].mxu0 }
 0x17e   :  { %232 = vst [vmem:[#allocation2 + $0x10] sm:$0x1] %v229_v41  ;;  %v216_v44 = vpop.f32.mrb[3].mxu0  ;;  %v253_v41 = vld [vmem:[%s1637_s0 + $0x30] sm:$0xff]  ;;  %v255_v43 = vld [vmem:[%s1637_s0 + $0x40] sm:$0xff] }
 0x185   :  { %v238_v45 = vld [vmem:[#allocation2 + $0x10] sm:$0x1] }
 0x186   :  { %v239_v46 = vmax.f32 %v238_v45, 1.0  ;;  %v257_v45 = vld [vmem:[%s1637_s0 + $0x50] sm:$0xff] }
 0x188   :  { %1298 = vrcp.f32 %v239_v46  ;;  %v258_v46 = vld [vmem:[%s1637_s0 + $0x58] sm:$0xff] }
 0x192   :  { %v1299_v49 = vpop.eup %1298 }
 0x193   :  { %v244_v50 = vrot.slane %v1299_v49, %v243_v48  ;;  %v260_v48 = vld [vmem:[%s1637_s0 + $0x68] sm:$0xff]  ;;  %v261_v49 = vld [vmem:[%s1637_s0 + $0x70] sm:$0xff] }
 0x195   :  { %v245_v51 = vmul.f32 %v244_v50, %v213_v42  ;;  %v246_v55 = vmul.f32 %v244_v50, %v216_v44  ;;  %v254_v42 = vld [vmem:[%s1637_s0 + $0x38] sm:$0xff]  ;;  %v256_v44 = vld [vmem:[%s1637_s0 + $0x48] sm:$0xff] }
 0x196   :  { %v262_v50 = vld [vmem:[%s1637_s0 + $0x78] sm:$0xff] }
 0x197   :  { %267 = vxpose.xlu0.b32.start [1/2] (short) %v245_v51, 128  ;;  %v742_v51 = vld [vmem:[%s1643_s6 + $0x70] sm:$0xff]  ;;  %s1327_s6 = smov [#allocation3]  }
 0x198   :  { %v1252_v53 = vpack.c.bf16 %v743_v52, %v742_v51 }
 0x19a   :  { %1253 = vmatprep.subr.bf16.mxu0 %v1252_v53 }
 0x19b   :  { %268 = vxpose.xlu0.b32.end [2/2] (short) %v246_v55, 128  ;;  %1255 = vmatpush3.bf16.msra.mxu0 %v1252_v53 }
 0x217   :  { %v283_v16 = vpop.trf.xlu0 }
 0x218   :  { %1100 = vmatprep.mubr.msk.f32.mxu1 %vm301_vm8, %v283_v16 }
 0x21b   :  { %v284_v20 = vpop.trf.xlu0 }
 0x21c   :  { %1101 = vmatmul.mubr.msk.f32.vlgmr.msra.gmra.mrb[0].mxu1 %vm301_vm8, %v284_v20 }
 0x21d   :  { %1219 = vmatpush3.bf16.msra.mxu1 %v1216_v58 }
 0x21e   :  { %1221 = vmatprep.subr.bf16.mxu1 %v1220_v19 }
 0x21f   :  { %v285_v21 = vpop.trf.xlu0 }
 0x220   :  { %1103 = vmatprep.mubr.msk.f32.mxu1 %vm301_vm8, %v285_v21 }
 0x221   :  { %1223 = vmatpush3.bf16.msra.mxu1 %v1220_v19 }
 0x222   :  { %1256 = vmatprep.subr.bf16.mxu1 %v1452_v62 }
 0x223   :  { %v286_v22 = vpop.trf.xlu0 }
 0x224   :  { %1104 = vmatmul.mubr.msk.f32.gmra.mrb[2].mxu1 %vm301_vm8, %v286_v22 }
 0x227   :  { %v287_v23 = vpop.trf.xlu0 }
 0x228   :  { %1106 = vmatprep.mubr.msk.f32.mxu1 %vm301_vm8, %v287_v23 }
 0x22b   :  { %v288_v24 = vpop.trf.xlu0 }
 0x22c   :  { %1107 = vmatmul.mubr.msk.f32.gmra.mrb[4].mxu1 %vm301_vm8, %v288_v24 }
 0x22f   :  { %v289_v25 = vpop.trf.xlu0 }
 0x230   :  { %1109 = vmatprep.mubr.msk.f32.mxu1 %vm301_vm8, %v289_v25 }
 0x233   :  { %v290_v26 = vpop.trf.xlu0 }
 0x234   :  { %1110 = vmatmul.mubr.msk.f32.gmra.mrb[6].mxu1 %vm301_vm8, %v290_v26 }
 0x237   :  { %v291_v27 = vpop.trf.xlu0 }
 0x238   :  { %1112 = vmatprep.mubr.msk.f32.mxu1 %vm301_vm8, %v291_v27 }
 0x23b   :  { %v292_v28 = vpop.trf.xlu0 }
 0x23c   :  { %1113 = vmatmul.mubr.msk.f32.gmra.mrb[8].mxu1 %vm301_vm8, %v292_v28 }
 0x23f   :  { %v293_v29 = vpop.trf.xlu0 }
 0x240   :  { %1115 = vmatprep.mubr.msk.f32.mxu1 %vm301_vm8, %v293_v29 }
 0x243   :  { %v294_v30 = vpop.trf.xlu0 }
 0x244   :  { %1116 = vmatmul.mubr.msk.f32.gmra.mrb[10].mxu1 %vm301_vm8, %v294_v30 }
 0x247   :  { %v295_v31 = vpop.trf.xlu0 }
 0x248   :  { %1118 = vmatprep.mubr.msk.f32.mxu1 %vm301_vm8, %v295_v31 }
 0x24b   :  { %v296_v32 = vpop.trf.xlu0 }
 0x24c   :  { %1119 = vmatmul.mubr.msk.f32.gmra.mrb[12].mxu1 %vm301_vm8, %v296_v32 }
 0x24f   :  { %v297_v33 = vpop.trf.xlu0 }
 0x250   :  { %1121 = vmatprep.mubr.msk.f32.mxu1 %vm301_vm8, %v297_v33 }
 0x253   :  { %v298_v35 = vpop.trf.xlu0 }
 0x254   :  { %1122 = vmatmul.mubr.msk.f32.gmra.mrb[14].mxu1 %vm301_vm8, %v298_v35 }
 0x255   :  { %1132 = vmatprep.mubr.msk.f32.mxu1 %vm495_vm9, %v247_v34 }
 0x258   :  { %1133 = vmatmul.mubr.msk.f32.vlgmr.msra.gmra.mrb[0].mxu1 %vm495_vm9, %v248_v36 }
 0x259   :  { %1135 = vmatprep.mubr.msk.f32.mxu1 %vm495_vm9, %v249_v37  ;;  %1264 = vmatpush3.bf16.msra.mxu1 %v1452_v62 }
 0x25a   :  { %1257 = vmatprep.subr.bf16.mxu1 %v1457_v0 }
 0x25c   :  { %1136 = vmatmul.mubr.msk.f32.gmra.mrb[2].mxu1 %vm495_vm9, %v250_v38 }
 0x25d   :  { %1138 = vmatprep.mubr.msk.f32.mxu1 %vm495_vm9, %v251_v39  ;;  %1265 = vmatpush3.bf16.msra.mxu1 %v1457_v0  ;;  %v995_v39 = vld [vmem:[%s1644_s7] ss:$0 sm:$0xff]  ;;  %s917_s7 = sshll.u32 %s1327_s6, 4  ;;  %s918_s7 = int_to_ptr.vmem [resolvable:$true] %s917_s7 }
 0x25e   :  { %1258 = vmatprep.subr.bf16.mxu1 %v1468_v3  ;;  %s1300_s1 = scalar_lea.vmem %s918_s7, 2048  ;;  %p1305_p1 = scmp.lt.s32.totalorder %s918_s7, %s918_s7 }
 0x25f   :  { %p1301_p0 = scmp.ne.s32.totalorder %s918_s7, %s1300_s1  ;;  %p1306_p2 = scmp.lt.s32.totalorder %s1300_s1, %s1300_s1 }
 0x260   :  { %1139 = vmatmul.mubr.msk.f32.gmra.mrb[4].mxu1 %vm495_vm9, %v252_v40 }
 0x261   :  { %1141 = vmatprep.mubr.msk.f32.mxu1 %vm495_vm9, %v253_v41  ;;  %1266 = vmatpush3.bf16.msra.mxu1 %v1468_v3  ;;  %p1307_p3 = por %p1306_p2, %p1305_p1 }
 0x262   :  { %1259 = vmatprep.subr.bf16.mxu1 %v1478_v6 }
 0x263   :  { %p1308_p4 = pnand %p1307_p3, %p1301_p0 }
 0x264   :  { %1142 = vmatmul.mubr.msk.f32.gmra.mrb[6].mxu1 %vm495_vm9, %v254_v42 }
 0x265   :  { %1144 = vmatprep.mubr.msk.f32.mxu1 %vm495_vm9, %v255_v43  ;;  %1267 = vmatpush3.bf16.msra.mxu1 %v1478_v6 }
 0x266   :  { %1260 = vmatprep.subr.bf16.mxu1 %v1488_v9 }
 0x268   :  { %1145 = vmatmul.mubr.msk.f32.gmra.mrb[8].mxu1 %vm495_vm9, %v256_v44 }
 0x269   :  { %1147 = vmatprep.mubr.msk.f32.mxu1 %vm495_vm9, %v257_v45  ;;  %1268 = vmatpush3.bf16.msra.mxu1 %v1488_v9 }
 0x26a   :  { %1261 = vmatprep.subr.bf16.mxu1 %v1498_v12 }
 0x26c   :  { %1148 = vmatmul.mubr.msk.f32.gmra.mrb[10].mxu1 %vm495_vm9, %v258_v46 }
 0x26d   :  { %1150 = vmatprep.mubr.msk.f32.mxu1 %vm495_vm9, %v259_v47  ;;  %1269 = vmatpush3.bf16.msra.mxu1 %v1498_v12 }
 0x26e   :  { %1262 = vmatprep.subr.bf16.mxu1 %v1508_v15 }
 0x270   :  { %1151 = vmatmul.mubr.msk.f32.gmra.mrb[12].mxu1 %vm495_vm9, %v260_v48 }
 0x271   :  { %1153 = vmatprep.mubr.msk.f32.mxu1 %vm495_vm9, %v261_v49  ;;  %1270 = vmatpush3.bf16.msra.mxu1 %v1508_v15 }
 0x272   :  { %1263 = vmatprep.subr.bf16.mxu1 %v1252_v53 }
 0x274   :  { %1154 = vmatmul.mubr.msk.f32.gmra.mrb[14].mxu1 %vm495_vm9, %v262_v50 }
 0x275   :  { %1271 = vmatpush3.bf16.msra.mxu1 %v1252_v53 }
 0x32b   :  { %v1134_v55 = vpop.f32.mrb[0].mxu1 }
 0x32c   :  { %v697_v56 = vadd.f32 %v1134_v55, %v994_v54  ;;  %v610_v57 = vpop.f32.mrb[1].mxu1 }
 0x32d   :  { %v696_v58 = vadd.f32 %v994_v54, %v610_v57 }
 0x32e   :  { %v713_v61 = vmax.f32 %v697_v56, 0.0 }
 0x32f   :  { %v712_v59 = vmax.f32 %v696_v58, 0.0  ;;  %v1137_v60 = vpop.f32.mrb[2].mxu1 }
 0x330   :  { %v699_v62 = vadd.f32 %v1137_v60, %v994_v54  ;;  %v620_v63 = vpop.f32.mrb[3].mxu1 }
 0x331   :  { %v698_v0 = vadd.f32 %v994_v54, %v620_v63  ;;  %1188 = vmatprep.mubr.f32.mxu0 %v712_v59 }
 0x332   :  { %1189 = vmatmul.mubr.f32.vlgmr.msra.gmra.mrb[4].mxu0 %v713_v61  ;;  %v715_v3 = vmax.f32 %v699_v62, 0.0 }
 0x333   :  { %v714_v1 = vmax.f32 %v698_v0, 0.0  ;;  %v1140_v2 = vpop.f32.mrb[4].mxu1 }
 0x334   :  { %v701_v4 = vadd.f32 %v1140_v2, %v994_v54  ;;  %v630_v5 = vpop.f32.mrb[5].mxu1 }
 0x335   :  { %v700_v6 = vadd.f32 %v994_v54, %v630_v5  ;;  %1191 = vmatprep.mubr.f32.mxu0 %v714_v1 }
 0x336   :  { %1192 = vmatmul.mubr.f32.gmra.mrb[6].mxu0 %v715_v3  ;;  %v717_v9 = vmax.f32 %v701_v4, 0.0 }
 0x337   :  { %v716_v7 = vmax.f32 %v700_v6, 0.0  ;;  %v1143_v8 = vpop.f32.mrb[6].mxu1 }
 0x338   :  { %v703_v10 = vadd.f32 %v1143_v8, %v994_v54  ;;  %v640_v11 = vpop.f32.mrb[7].mxu1 }
 0x339   :  { %v702_v12 = vadd.f32 %v994_v54, %v640_v11  ;;  %1194 = vmatprep.mubr.f32.mxu0 %v716_v7 }
 0x33a   :  { %1195 = vmatmul.mubr.f32.gmra.mrb[8].mxu0 %v717_v9  ;;  %v719_v15 = vmax.f32 %v703_v10, 0.0 }
 0x33b   :  { %v718_v13 = vmax.f32 %v702_v12, 0.0  ;;  %v1146_v14 = vpop.f32.mrb[8].mxu1 }
 0x33c   :  { %v705_v16 = vadd.f32 %v1146_v14, %v994_v54  ;;  %v650_v17 = vpop.f32.mrb[9].mxu1 }
 0x33d   :  { %v704_v18 = vadd.f32 %v994_v54, %v650_v17  ;;  %1197 = vmatprep.mubr.f32.mxu0 %v718_v13 }
 0x33e   :  { %1198 = vmatmul.mubr.f32.gmra.mrb[10].mxu0 %v719_v15  ;;  %v721_v21 = vmax.f32 %v705_v16, 0.0 }
 0x33f   :  { %v720_v19 = vmax.f32 %v704_v18, 0.0  ;;  %v1149_v20 = vpop.f32.mrb[10].mxu1 }
 0x340   :  { %v707_v22 = vadd.f32 %v1149_v20, %v994_v54  ;;  %v660_v23 = vpop.f32.mrb[11].mxu1 }
 0x341   :  { %v706_v24 = vadd.f32 %v994_v54, %v660_v23  ;;  %1200 = vmatprep.mubr.f32.mxu0 %v720_v19 }
 0x342   :  { %1201 = vmatmul.mubr.f32.gmra.mrb[12].mxu0 %v721_v21  ;;  %v723_v27 = vmax.f32 %v707_v22, 0.0 }
 0x343   :  { %v722_v25 = vmax.f32 %v706_v24, 0.0  ;;  %v1152_v26 = vpop.f32.mrb[12].mxu1 }
 0x344   :  { %v709_v28 = vadd.f32 %v1152_v26, %v994_v54  ;;  %v670_v29 = vpop.f32.mrb[13].mxu1 }
 0x345   :  { %v708_v30 = vadd.f32 %v994_v54, %v670_v29  ;;  %1203 = vmatprep.mubr.f32.mxu1 %v722_v25 }
 0x346   :  { %1204 = vmatmul.mubr.f32.vlgmr.msra.gmra.mrb[16].mxu1 %v723_v27  ;;  %v725_v33 = vmax.f32 %v709_v28, 0.0 }
 0x347   :  { %v724_v31 = vmax.f32 %v708_v30, 0.0  ;;  %v1155_v32 = vpop.f32.mrb[14].mxu1 }
 0x348   :  { %v711_v34 = vadd.f32 %v1155_v32, %v994_v54  ;;  %v680_v35 = vpop.f32.mrb[15].mxu1 }
 0x349   :  { %v710_v36 = vadd.f32 %v994_v54, %v680_v35  ;;  %1206 = vmatprep.mubr.f32.mxu1 %v724_v31 }
 0x34a   :  { %1207 = vmatmul.mubr.f32.gmra.mrb[18].mxu1 %v725_v33  ;;  %v727_v38 = vmax.f32 %v711_v34, 0.0 }
 0x34b   :  { %v726_v37 = vmax.f32 %v710_v36, 0.0 }
 0x34d   :  { %1209 = vmatprep.mubr.f32.mxu1 %v726_v37 }
 0x34e   :  { %1210 = vmatmul.mubr.f32.gmra.mrb[20].mxu1 %v727_v38 }
 0x405   :  { %v1190_v40 = vpop.f32.mrb[4].mxu0 }
 0x406   :  { %v823_v41 = vadd.f32 %v1190_v40, %v995_v39  ;;  %v817_v42 = vpop.f32.mrb[5].mxu0 }
 0x407   :  { %v818_v43 = vadd.f32 %v995_v39, %v817_v42 }
 0x408   :  { %897 = vst [vmem:[#allocation3 + $0x8] sm:$0xff] %v823_v41 }
 0x409   :  { %896 = vst [vmem:[#allocation3] sm:$0xff] %v818_v43  ;;  %v1193_v44 = vpop.f32.mrb[6].mxu0 }
 0x40a   :  { %v833_v45 = vadd.f32 %v1193_v44, %v995_v39  ;;  %v827_v46 = vpop.f32.mrb[7].mxu0 }
 0x40b   :  { %v828_v47 = vadd.f32 %v995_v39, %v827_v46 }
 0x40c   :  { %899 = vst [vmem:[#allocation3 + $0x18] sm:$0xff] %v833_v45 }
 0x40d   :  { %898 = vst [vmem:[#allocation3 + $0x10] sm:$0xff] %v828_v47  ;;  %v1196_v48 = vpop.f32.mrb[8].mxu0 }
 0x40e   :  { %v843_v49 = vadd.f32 %v1196_v48, %v995_v39  ;;  %v837_v50 = vpop.f32.mrb[9].mxu0 }
 0x40f   :  { %v838_v51 = vadd.f32 %v995_v39, %v837_v50 }
 0x410   :  { %901 = vst [vmem:[#allocation3 + $0x28] sm:$0xff] %v843_v49 }
 0x411   :  { %900 = vst [vmem:[#allocation3 + $0x20] sm:$0xff] %v838_v51  ;;  %v1199_v52 = vpop.f32.mrb[10].mxu0 }
 0x412   :  { %v853_v53 = vadd.f32 %v1199_v52, %v995_v39  ;;  %v847_v54 = vpop.f32.mrb[11].mxu0 }
 0x413   :  { %v848_v55 = vadd.f32 %v995_v39, %v847_v54 }
 0x414   :  { %903 = vst [vmem:[#allocation3 + $0x38] sm:$0xff] %v853_v53 }
 0x415   :  { %902 = vst [vmem:[#allocation3 + $0x30] sm:$0xff] %v848_v55  ;;  %v1202_v56 = vpop.f32.mrb[12].mxu0 }
 0x416   :  { %v863_v57 = vadd.f32 %v1202_v56, %v995_v39  ;;  %v857_v58 = vpop.f32.mrb[13].mxu0 }
 0x417   :  { %v858_v59 = vadd.f32 %v995_v39, %v857_v58 }
 0x418   :  { %905 = vst [vmem:[#allocation3 + $0x48] sm:$0xff] %v863_v57 }
 0x419   :  { %904 = vst [vmem:[#allocation3 + $0x40] sm:$0xff] %v858_v59  ;;  %v1205_v60 = vpop.f32.mrb[16].mxu1 }
 0x41a   :  { %v873_v61 = vadd.f32 %v1205_v60, %v995_v39  ;;  %v867_v62 = vpop.f32.mrb[17].mxu1 }
 0x41b   :  { %v868_v63 = vadd.f32 %v995_v39, %v867_v62 }
 0x41c   :  { %907 = vst [vmem:[#allocation3 + $0x58] sm:$0xff] %v873_v61 }
 0x41d   :  { %906 = vst [vmem:[#allocation3 + $0x50] sm:$0xff] %v868_v63  ;;  %v1208_v0 = vpop.f32.mrb[18].mxu1 }
 0x41e   :  { %v883_v1 = vadd.f32 %v1208_v0, %v995_v39  ;;  %v877_v2 = vpop.f32.mrb[19].mxu1 }
 0x41f   :  { %v878_v3 = vadd.f32 %v995_v39, %v877_v2 }
 0x420   :  { %909 = vst [vmem:[#allocation3 + $0x68] sm:$0xff] %v883_v1 }
 0x421   :  { %908 = vst [vmem:[#allocation3 + $0x60] sm:$0xff] %v878_v3  ;;  %v1211_v4 = vpop.f32.mrb[20].mxu1 }
 0x422   :  { %v893_v5 = vadd.f32 %v1211_v4, %v995_v39  ;;  %v887_v6 = vpop.f32.mrb[21].mxu1 }
 0x423   :  { %v888_v7 = vadd.f32 %v995_v39, %v887_v6 }
 0x424   :  { %911 = vst [vmem:[#allocation3 + $0x78] sm:$0xff] %v893_v5 }
 0x425   :  { %910 = vst [vmem:[#allocation3 + $0x70] sm:$0xff] %v888_v7 }
 0x426   :  { %1311 = shalt.err (!%p1308_p4)
}
 0x427   :  { %s1312_s21 = scalar_lea.hbm %s1645_s8, 2048 }
 0x428   :  { %p1313_p5 = scmp.ne.s32.totalorder %s1645_s8, %s1312_s21  ;;  %p1316_p6 = scmp.lt.u32.totalorder %s1312_s21, %s1645_s8 }
 0x42a   :  { %p1318_p7 = pnand %p1316_p6, %p1313_p5 }
 0x42c   :  { %1321 = shalt.err (!%p1318_p7)
}
 0x42d   :  { %s1328_s26 = smov 128   ;;  %s1329_s4 = smov 8  }
 0x42e   :  { %923 = dma.vmem_to_hbm [thread:$0]  %s918_s7, 2048, %s1645_s8, [#allocation4], %s1328_s26, %s1328_s26, %s1329_s4  }
 0x42f   :  { %1322 = dma.done.wait [#allocation4], 2048  }
 0x430   :  { %1323 = vsyncadd [#allocation4], 4294965248 }
 0x431   :  { %927 = vsyncpa [#allocation4], 1 }

</bundles_post_ra>
